<compile_context>
chip_gen: v7x
topology: tpu7x:2x2x1
jax: 0.10.0
libtpu: 0.0.40
codegen_flags: <defaults>
</compile_context>

<pallas_src>
import functools

import jax
import jax.numpy as jnp
from jax import lax
from jax.experimental import pallas as pl
from jax.experimental.pallas import tpu as pltpu


def _make_kernel(*, C, S, K, T, B_blk, contract_w, H, W):
    w_f = float(W)
    h_f = float(H)

    def kernel(cs_ref, img_ref, h2_ref, rot_ref, loss_ref):
        nb = pl.program_id(0)   # batch-block index
        t = pl.program_id(1)    # output-pixel tile index

        # ---- output-pixel coordinates for this lane tile (pure float path) ----
        # o = i*W + j  ->  i = floor((o + 0.5)/W)  (robust, no int div/mod).
        of = (lax.broadcasted_iota(jnp.int32, (1, T), 1).astype(jnp.float32)
              + (t * T).astype(jnp.float32))
        i_f = jnp.floor((of + 0.5) / w_f)            # output row
        j_f = of - i_f * w_f                         # output col

        # affine_grid, align_corners=False: normalized coords in (-1, 1).
        xo = (2.0 * j_f + 1.0) / w_f - 1.0
        yo = (2.0 * i_f + 1.0) / h_f - 1.0

        # Batch-independent tent-iota operands, hoisted out of the batch loop
        # (JAX does not CSE broadcasts).
        k_iota = lax.broadcasted_iota(jnp.int32, (K, T), 0).astype(jnp.float32)
        s_iota = lax.broadcasted_iota(jnp.int32, (S, T), 0).astype(jnp.float32)

        def body(b, loss_acc):
            g = nb * B_blk + b
            cos_t = cs_ref[g, 0]
            sin_t = cs_ref[g, 1]

            # theta @ [x, y, 1]
            gx = cos_t * xo - sin_t * yo
            gy = sin_t * xo + cos_t * yo

            # grid_sample un-normalization (align_corners=False).
            ix = ((gx + 1.0) * w_f - 1.0) * 0.5      # source coord along W
            iy = ((gy + 1.0) * h_f - 1.0) * 0.5      # source coord along H

            kc = ix if contract_w else iy            # coord along MXU axis K
            sc = iy if contract_w else ix            # coord along VPU axis S

            # Bilinear "tent" weights: max(0, 1 - |idx - coord|) equals the
            # two-corner bilinear weight exactly; zeros padding is automatic
            # because the iota only covers [0, K-1] / [0, S-1].
            wk_t = jnp.maximum(1.0 - jnp.abs(k_iota - kc), 0.0)   # (K, T)
            ws_t = jnp.maximum(1.0 - jnp.abs(s_iota - sc), 0.0)   # (S, T)

            # MXU: contract the larger spatial axis.  (C*S, K) @ (K, T).
            u = lax.dot_general(img_ref[b], wk_t, (((1,), (0,)), ((), ())),
                                preferred_element_type=jnp.float32)

            # VPU multiply + sublane reduce over S (S % 8 == 0 preferred so
            # the reshape is a free relayout).
            rot = jnp.sum(u.reshape(C, S, T) * ws_t[None, :, :], axis=1)  # (C, T)
            rot_ref[b] = rot.astype(rot_ref.dtype)

            diff = rot - h2_ref[b]
            return loss_acc + jnp.sum(diff * diff, axis=(0, 1), keepdims=True)

        total = lax.fori_loop(0, B_blk, body, jnp.zeros((1, 1), jnp.float32),
                              unroll=True)
        loss_ref[0] = total

    return kernel


def _plan(N, C, H, W):
    """Choose MXU orientation, output-pixel tile T, batch block, VMEM limit."""
    HW = H * W

    # Prefer the orientation whose VPU-reduce axis S is a sublane multiple
    # (free reshape), then the larger MXU contraction K.
    def score(contract_w):
        K = W if contract_w else H
        S = H if contract_w else W
        return (S % 8 == 0, K)
    contract_w = max((True, False), key=score)
    K = W if contract_w else H
    S = H if contract_w else W

    el = 4  # f32

    def est(T, B):
        inner = (2 * C * S * T            # u + pre-reduce product
                 + (K + S) * T            # tent operators
                 + 3 * C * T              # rot / diff / temp
                 + 8 * T) * el            # (1,T) row vectors
        io = 2 * B * (C * S * K + 2 * C * T) * el   # double-buffered img/h2/rot
        return inner + io

    budget = 12 << 20   # keep per-step working set well under v7x's VMEM
    if HW % 128 != 0:
        T = HW          # lane tile must be a multiple of 128 or the full dim
    else:
        divs = [d for d in range(128, HW + 1, 128) if HW % d == 0]
        fitting = [d for d in divs if est(d, 1) <= budget]
        T = max(fitting) if fitting else min(divs)

    B_blk = 1
    for b in range(min(N, 8), 0, -1):
        if N % b == 0 and est(T, b) <= budget:
            B_blk = b
            break

    vmem_limit = int(min(max(2 * est(T, B_blk) + (4 << 20), 16 << 20), 32 << 20))
    return contract_w, K, S, T, B_blk, vmem_limit


def rotation_loss(heatmap_1, heatmap_2, deg):
    """Pallas equivalent of rotation_loss.forward. Returns (loss, rotated_heatmap)."""
    heatmap_1 = heatmap_1.astype(jnp.float32)
    heatmap_2 = heatmap_2.astype(jnp.float32)
    N, C, H, W = heatmap_1.shape
    HW = H * W

    contract_w, K, S, T, B_blk, vmem_limit = _plan(N, C, H, W)
    GN, GT = N // B_blk, HW // T

    angle = jnp.pi * deg.astype(jnp.float32) / 180.0
    cs = jnp.stack([jnp.cos(angle), jnp.sin(angle)], axis=1)   # (N, 2), scalar-prefetched

    # Lane-dense / matmul-friendly layouts (wrapper reshapes are free plumbing).
    if contract_w:
        img = heatmap_1.reshape(N, C * H, W)                      # contract over W
    else:
        img = heatmap_1.transpose(0, 1, 3, 2).reshape(N, C * W, H)  # contract over H
    h2_flat = heatmap_2.reshape(N, C, HW)

    kernel = _make_kernel(C=C, S=S, K=K, T=T, B_blk=B_blk,
                          contract_w=contract_w, H=H, W=W)

    grid_spec = pltpu.PrefetchScalarGridSpec(
        num_scalar_prefetch=1,
        grid=(GN, GT),
        in_specs=[
            # image block is constant along the tile axis -> fetched once per nb
            pl.BlockSpec((B_blk, C * S, K), lambda nb, t, cs_ref: (nb, 0, 0)),
            pl.BlockSpec((B_blk, C, T), lambda nb, t, cs_ref: (nb, 0, t)),
        ],
        out_specs=[
            pl.BlockSpec((B_blk, C, T), lambda nb, t, cs_ref: (nb, 0, t)),
            pl.BlockSpec((1, 1, 1), lambda nb, t, cs_ref: (nb * GT + t, 0, 0)),
        ],
    )

    rotated_flat, loss_parts = pl.pallas_call(
        kernel,
        out_shape=(
            jax.ShapeDtypeStruct((N, C, HW), jnp.float32),
            jax.ShapeDtypeStruct((GN * GT, 1, 1), jnp.float32),
        ),
        grid_spec=grid_spec,
        compiler_params=pltpu.CompilerParams(
            dimension_semantics=("parallel", "parallel"),
            vmem_limit_bytes=vmem_limit),
    )(cs, img, h2_flat)

    loss = jnp.sum(loss_parts) / jnp.float32(N * C * HW)
    rotated = rotated_flat.reshape(N, C, H, W)
    return loss, rotated


def _reference(heatmap_1, heatmap_2, deg):
    """Pure-JAX reference (gather-based bilinear grid_sample) for validation."""
    N, C, H, W = heatmap_1.shape
    ang = jnp.pi * deg / 180.0
    c, s = jnp.cos(ang), jnp.sin(ang)

    xo = (2.0 * jnp.arange(W) + 1.0) / W - 1.0
    yo = (2.0 * jnp.arange(H) + 1.0) / H - 1.0
    xo_g, yo_g = jnp.meshgrid(xo, yo)                 # (H, W)

    gx = c[:, None, None] * xo_g - s[:, None, None] * yo_g
    gy = s[:, None, None] * xo_g + c[:, None, None] * yo_g
    ix = ((gx + 1.0) * W - 1.0) * 0.5
    iy = ((gy + 1.0) * H - 1.0) * 0.5
    x0 = jnp.floor(ix).astype(jnp.int32)
    y0 = jnp.floor(iy).astype(jnp.int32)
    wx1 = ix - x0
    wy1 = iy - y0

    def sample_one(img, y0, x0, wy1, wx1):
        def gather(yc, xc):
            valid = ((xc >= 0) & (xc < W) & (yc >= 0) & (yc < H)).astype(jnp.float32)
            ycc = jnp.clip(yc, 0, H - 1)
            xcc = jnp.clip(xc, 0, W - 1)
            return img[:, ycc, xcc] * valid[None]
        return ((1 - wy1) * (1 - wx1) * gather(y0, x0)
                + (1 - wy1) * wx1 * gather(y0, x0 + 1)
                + wy1 * (1 - wx1) * gather(y0 + 1, x0)
                + wy1 * wx1 * gather(y0 + 1, x0 + 1))

    rot = jax.vmap(sample_one)(heatmap_1, y0, x0, wy1, wx1)
    loss = jnp.mean((rot - heatmap_2) ** 2)
    return loss, rot


if __name__ == "__main__":
    key = jax.random.PRNGKey(0)
    k1, k2 = jax.random.split(key)
    N, C, H, W = 2, 4, 16, 16
    heatmap_1 = jax.random.normal(k1, (N, C, H, W), dtype=jnp.float32)
    heatmap_2 = jax.random.normal(k2, (N, C, H, W), dtype=jnp.float32)
    deg = jnp.array([30.0, -45.0], dtype=jnp.float32)

    loss, rotated = rotation_loss(heatmap_1, heatmap_2, deg)
    jax.block_until_ready((loss, rotated))

    ref_loss, ref_rot = _reference(heatmap_1, heatmap_2, deg)
    assert jnp.allclose(rotated, ref_rot, atol=1e-4), "rotated heatmap mismatch"
    assert jnp.allclose(loss, ref_loss, atol=1e-5), "loss mismatch"

    print("KERNEL_OK")
</pallas_src>

<mosaic_0001>
module attributes {stable_mosaic.version = 11 : i64} {
  func.func @kernel(%arg0: i32, %arg1: i32, %arg2: memref<2x2xf32, #tpu.memory_space<smem>>, %arg3: memref<2x64x16xf32, #tpu.memory_space<vmem>>, %arg4: memref<2x4x256xf32, #tpu.memory_space<vmem>>, %arg5: memref<2x4x256xf32, #tpu.memory_space<vmem>>, %arg6: memref<1x1x1xf32, #tpu.memory_space<vmem>>) attributes {dimension_semantics = [#tpu.dimension_semantics<parallel>, #tpu.dimension_semantics<parallel>], iteration_bounds = array<i64: 1, 1>, scalar_prefetch = 1 : i64, scratch_operands = 0 : i64, tpu.core_type = #tpu.core_type<tc>, window_params = [{transform_indices = @transform_0, window_bounds = array<i64: 2, 64, 16>}, {transform_indices = @transform_1, window_bounds = array<i64: 2, 4, 256>}, {transform_indices = @transform_2, window_bounds = array<i64: 2, 4, 256>}, {transform_indices = @transform_3, window_bounds = array<i64: 1, 1, 1>}]} {
    %0 = tpu.iota {dimensions = array<i32: 1>} : vector<1x256xi32>
    %1 = arith.sitofp %0 : vector<1x256xi32> to vector<1x256xf32>
    %c256_i32 = arith.constant 256 : i32
    %2 = arith.muli %arg1, %c256_i32 : i32
    %3 = arith.sitofp %2 : i32 to f32
    %4 = vector.broadcast %3 : f32 to vector<1x256xf32>
    %5 = arith.addf %1, %4 : vector<1x256xf32>
    %cst = arith.constant 5.000000e-01 : f32
    %6 = vector.broadcast %cst : f32 to vector<1x256xf32>
    %7 = arith.addf %5, %6 : vector<1x256xf32>
    %cst_0 = arith.constant 1.600000e+01 : f32
    %8 = vector.broadcast %cst_0 : f32 to vector<1x256xf32>
    %9 = arith.divf %7, %8 : vector<1x256xf32>
    %10 = math.floor %9 : vector<1x256xf32>
    %cst_1 = arith.constant 1.600000e+01 : f32
    %11 = vector.broadcast %cst_1 : f32 to vector<1x256xf32>
    %12 = arith.mulf %10, %11 : vector<1x256xf32>
    %13 = arith.subf %5, %12 : vector<1x256xf32>
    %cst_2 = arith.constant 2.000000e+00 : f32
    %14 = vector.broadcast %cst_2 : f32 to vector<1x256xf32>
    %15 = arith.mulf %14, %13 : vector<1x256xf32>
    %cst_3 = arith.constant 1.000000e+00 : f32
    %16 = vector.broadcast %cst_3 : f32 to vector<1x256xf32>
    %17 = arith.addf %15, %16 : vector<1x256xf32>
    %cst_4 = arith.constant 1.600000e+01 : f32
    %18 = vector.broadcast %cst_4 : f32 to vector<1x256xf32>
    %19 = arith.divf %17, %18 : vector<1x256xf32>
    %cst_5 = arith.constant 1.000000e+00 : f32
    %20 = vector.broadcast %cst_5 : f32 to vector<1x256xf32>
    %21 = arith.subf %19, %20 : vector<1x256xf32>
    %cst_6 = arith.constant 2.000000e+00 : f32
    %22 = vector.broadcast %cst_6 : f32 to vector<1x256xf32>
    %23 = arith.mulf %22, %10 : vector<1x256xf32>
    %cst_7 = arith.constant 1.000000e+00 : f32
    %24 = vector.broadcast %cst_7 : f32 to vector<1x256xf32>
    %25 = arith.addf %23, %24 : vector<1x256xf32>
    %cst_8 = arith.constant 1.600000e+01 : f32
    %26 = vector.broadcast %cst_8 : f32 to vector<1x256xf32>
    %27 = arith.divf %25, %26 : vector<1x256xf32>
    %cst_9 = arith.constant 1.000000e+00 : f32
    %28 = vector.broadcast %cst_9 : f32 to vector<1x256xf32>
    %29 = arith.subf %27, %28 : vector<1x256xf32>
    %30 = tpu.iota {dimensions = array<i32: 0>} : vector<16x256xi32>
    %31 = arith.sitofp %30 : vector<16x256xi32> to vector<16x256xf32>
    %32 = tpu.iota {dimensions = array<i32: 0>} : vector<16x256xi32>
    %33 = arith.sitofp %32 : vector<16x256xi32> to vector<16x256xf32>
    %cst_10 = arith.constant 0.000000e+00 : f32
    %34 = vector.broadcast %cst_10 : f32 to vector<1x1xf32>
    %c0_i32 = arith.constant 0 : i32
    %c2_i32 = arith.constant 2 : i32
    %35 = arith.muli %arg0, %c2_i32 : i32
    %36 = arith.addi %35, %c0_i32 : i32
    %37 = arith.index_cast %36 : i32 to index
    %c0 = arith.constant 0 : index
    %38 = memref.load %arg2[%37, %c0] : memref<2x2xf32, #tpu.memory_space<smem>>
    %39 = arith.index_cast %36 : i32 to index
    %c1 = arith.constant 1 : index
    %40 = memref.load %arg2[%39, %c1] : memref<2x2xf32, #tpu.memory_space<smem>>
    %41 = vector.broadcast %38 : f32 to vector<1x256xf32>
    %42 = arith.mulf %41, %21 : vector<1x256xf32>
    %43 = vector.broadcast %40 : f32 to vector<1x256xf32>
    %44 = arith.mulf %43, %29 : vector<1x256xf32>
    %45 = arith.subf %42, %44 : vector<1x256xf32>
    %46 = vector.broadcast %40 : f32 to vector<1x256xf32>
    %47 = arith.mulf %46, %21 : vector<1x256xf32>
    %48 = vector.broadcast %38 : f32 to vector<1x256xf32>
    %49 = arith.mulf %48, %29 : vector<1x256xf32>
    %50 = arith.addf %47, %49 : vector<1x256xf32>
    %cst_11 = arith.constant 1.000000e+00 : f32
    %51 = vector.broadcast %cst_11 : f32 to vector<1x256xf32>
    %52 = arith.addf %45, %51 : vector<1x256xf32>
    %cst_12 = arith.constant 1.600000e+01 : f32
    %53 = vector.broadcast %cst_12 : f32 to vector<1x256xf32>
    %54 = arith.mulf %52, %53 : vector<1x256xf32>
    %cst_13 = arith.constant 1.000000e+00 : f32
    %55 = vector.broadcast %cst_13 : f32 to vector<1x256xf32>
    %56 = arith.subf %54, %55 : vector<1x256xf32>
    %cst_14 = arith.constant 5.000000e-01 : f32
    %57 = vector.broadcast %cst_14 : f32 to vector<1x256xf32>
    %58 = arith.mulf %56, %57 : vector<1x256xf32>
    %cst_15 = arith.constant 1.000000e+00 : f32
    %59 = vector.broadcast %cst_15 : f32 to vector<1x256xf32>
    %60 = arith.addf %50, %59 : vector<1x256xf32>
    %cst_16 = arith.constant 1.600000e+01 : f32
    %61 = vector.broadcast %cst_16 : f32 to vector<1x256xf32>
    %62 = arith.mulf %60, %61 : vector<1x256xf32>
    %cst_17 = arith.constant 1.000000e+00 : f32
    %63 = vector.broadcast %cst_17 : f32 to vector<1x256xf32>
    %64 = arith.subf %62, %63 : vector<1x256xf32>
    %cst_18 = arith.constant 5.000000e-01 : f32
    %65 = vector.broadcast %cst_18 : f32 to vector<1x256xf32>
    %66 = arith.mulf %64, %65 : vector<1x256xf32>
    %67 = vector.broadcast %58 : vector<1x256xf32> to vector<16x256xf32>
    %68 = arith.subf %31, %67 : vector<16x256xf32>
    %69 = math.absf %68 : vector<16x256xf32>
    %cst_19 = arith.constant 1.000000e+00 : f32
    %70 = vector.broadcast %cst_19 : f32 to vector<16x256xf32>
    %71 = arith.subf %70, %69 : vector<16x256xf32>
    %cst_20 = arith.constant 0.000000e+00 : f32
    %72 = vector.broadcast %cst_20 : f32 to vector<16x256xf32>
    %73 = arith.maximumf %71, %72 : vector<16x256xf32>
    %74 = vector.broadcast %66 : vector<1x256xf32> to vector<16x256xf32>
    %75 = arith.subf %33, %74 : vector<16x256xf32>
    %76 = math.absf %75 : vector<16x256xf32>
    %cst_21 = arith.constant 1.000000e+00 : f32
    %77 = vector.broadcast %cst_21 : f32 to vector<16x256xf32>
    %78 = arith.subf %77, %76 : vector<16x256xf32>
    %cst_22 = arith.constant 0.000000e+00 : f32
    %79 = vector.broadcast %cst_22 : f32 to vector<16x256xf32>
    %80 = arith.maximumf %78, %79 : vector<16x256xf32>
    %81 = arith.index_cast %c0_i32 : i32 to index
    %c0_23 = arith.constant 0 : index
    %c0_24 = arith.constant 0 : index
    %82 = vector.load %arg3[%81, %c0_23, %c0_24] : memref<2x64x16xf32, #tpu.memory_space<vmem>>, vector<1x64x16xf32>
    %83 = vector.shape_cast %82 : vector<1x64x16xf32> to vector<64x16xf32>
    %cst_25 = arith.constant dense<0.000000e+00> : vector<64x256xf32>
    %84 = tpu.matmul %83, %73, %cst_25 {dimension_numbers = #tpu.dot_dimension_numbers<[1], [0], [0], [1], [0, 0, 1, 1], [], []>} : vector<64x16xf32>, vector<16x256xf32>, vector<64x256xf32> -> vector<64x256xf32>
    %85 = vector.shape_cast %84 : vector<64x256xf32> to vector<4x16x256xf32>
    %86 = vector.shape_cast %80 : vector<16x256xf32> to vector<1x16x256xf32>
    %87 = vector.broadcast %86 : vector<1x16x256xf32> to vector<4x16x256xf32>
    %88 = arith.mulf %85, %87 : vector<4x16x256xf32>
    %cst_26 = arith.constant dense<0.000000e+00> : vector<4x256xf32>
    %89 = vector.multi_reduction <add>, %88, %cst_26 [1] : vector<4x16x256xf32> to vector<4x256xf32>
    %90 = arith.index_cast %c0_i32 : i32 to index
    %c0_27 = arith.constant 0 : index
    %c0_28 = arith.constant 0 : index
    %91 = vector.load %arg5[%90, %c0_27, %c0_28] : memref<2x4x256xf32, #tpu.memory_space<vmem>>, vector<1x4x256xf32>
    %92 = vector.shape_cast %91 : vector<1x4x256xf32> to vector<4x256xf32>
    %93 = vector.shape_cast %89 : vector<4x256xf32> to vector<1x4x256xf32>
    tpu.vector_store %arg5[%90, %c0_27, %c0_28], %93 {strides = array<i32>} : memref<2x4x256xf32, #tpu.memory_space<vmem>>, vector<1x4x256xf32>,
    %94 = arith.index_cast %c0_i32 : i32 to index
    %c0_29 = arith.constant 0 : index
    %c0_30 = arith.constant 0 : index
    %95 = vector.load %arg4[%94, %c0_29, %c0_30] : memref<2x4x256xf32, #tpu.memory_space<vmem>>, vector<1x4x256xf32>
    %96 = vector.shape_cast %95 : vector<1x4x256xf32> to vector<4x256xf32>
    %97 = arith.subf %89, %96 : vector<4x256xf32>
    %98 = arith.mulf %97, %97 : vector<4x256xf32>
    %99 = vector.shape_cast %98 : vector<4x256xf32> to vector<1x4x256xf32>
    %cst_31 = arith.constant dense<0.000000e+00> : vector<1xf32>
    %100 = vector.multi_reduction <add>, %99, %cst_31 [1, 2] : vector<1x4x256xf32> to vector<1xf32>
    %101 = vector.shape_cast %100 : vector<1xf32> to vector<1x1x1xf32>
    %102 = vector.extract %101[0, 0, 0] : f32 from vector<1x1x1xf32>
    %103 = vector.broadcast %102 : f32 to vector<1x1xf32>
    %104 = arith.addf %34, %103 : vector<1x1xf32>
    %c1_i32 = arith.constant 1 : i32
    %c2_i32_32 = arith.constant 2 : i32
    %105 = arith.muli %arg0, %c2_i32_32 : i32
    %106 = arith.addi %105, %c1_i32 : i32
    %107 = arith.index_cast %106 : i32 to index
    %c0_33 = arith.constant 0 : index
    %108 = memref.load %arg2[%107, %c0_33] : memref<2x2xf32, #tpu.memory_space<smem>>
    %109 = arith.index_cast %106 : i32 to index
    %c1_34 = arith.constant 1 : index
    %110 = memref.load %arg2[%109, %c1_34] : memref<2x2xf32, #tpu.memory_space<smem>>
    %111 = vector.broadcast %108 : f32 to vector<1x256xf32>
    %112 = arith.mulf %111, %21 : vector<1x256xf32>
    %113 = vector.broadcast %110 : f32 to vector<1x256xf32>
    %114 = arith.mulf %113, %29 : vector<1x256xf32>
    %115 = arith.subf %112, %114 : vector<1x256xf32>
    %116 = vector.broadcast %110 : f32 to vector<1x256xf32>
    %117 = arith.mulf %116, %21 : vector<1x256xf32>
    %118 = vector.broadcast %108 : f32 to vector<1x256xf32>
    %119 = arith.mulf %118, %29 : vector<1x256xf32>
    %120 = arith.addf %117, %119 : vector<1x256xf32>
    %cst_35 = arith.constant 1.000000e+00 : f32
    %121 = vector.broadcast %cst_35 : f32 to vector<1x256xf32>
    %122 = arith.addf %115, %121 : vector<1x256xf32>
    %cst_36 = arith.constant 1.600000e+01 : f32
    %123 = vector.broadcast %cst_36 : f32 to vector<1x256xf32>
    %124 = arith.mulf %122, %123 : vector<1x256xf32>
    %cst_37 = arith.constant 1.000000e+00 : f32
    %125 = vector.broadcast %cst_37 : f32 to vector<1x256xf32>
    %126 = arith.subf %124, %125 : vector<1x256xf32>
    %cst_38 = arith.constant 5.000000e-01 : f32
    %127 = vector.broadcast %cst_38 : f32 to vector<1x256xf32>
    %128 = arith.mulf %126, %127 : vector<1x256xf32>
    %cst_39 = arith.constant 1.000000e+00 : f32
    %129 = vector.broadcast %cst_39 : f32 to vector<1x256xf32>
    %130 = arith.addf %120, %129 : vector<1x256xf32>
    %cst_40 = arith.constant 1.600000e+01 : f32
    %131 = vector.broadcast %cst_40 : f32 to vector<1x256xf32>
    %132 = arith.mulf %130, %131 : vector<1x256xf32>
    %cst_41 = arith.constant 1.000000e+00 : f32
    %133 = vector.broadcast %cst_41 : f32 to vector<1x256xf32>
    %134 = arith.subf %132, %133 : vector<1x256xf32>
    %cst_42 = arith.constant 5.000000e-01 : f32
    %135 = vector.broadcast %cst_42 : f32 to vector<1x256xf32>
    %136 = arith.mulf %134, %135 : vector<1x256xf32>
    %137 = vector.broadcast %128 : vector<1x256xf32> to vector<16x256xf32>
    %138 = arith.subf %31, %137 : vector<16x256xf32>
    %139 = math.absf %138 : vector<16x256xf32>
    %cst_43 = arith.constant 1.000000e+00 : f32
    %140 = vector.broadcast %cst_43 : f32 to vector<16x256xf32>
    %141 = arith.subf %140, %139 : vector<16x256xf32>
    %cst_44 = arith.constant 0.000000e+00 : f32
    %142 = vector.broadcast %cst_44 : f32 to vector<16x256xf32>
    %143 = arith.maximumf %141, %142 : vector<16x256xf32>
    %144 = vector.broadcast %136 : vector<1x256xf32> to vector<16x256xf32>
    %145 = arith.subf %33, %144 : vector<16x256xf32>
    %146 = math.absf %145 : vector<16x256xf32>
    %cst_45 = arith.constant 1.000000e+00 : f32
    %147 = vector.broadcast %cst_45 : f32 to vector<16x256xf32>
    %148 = arith.subf %147, %146 : vector<16x256xf32>
    %cst_46 = arith.constant 0.000000e+00 : f32
    %149 = vector.broadcast %cst_46 : f32 to vector<16x256xf32>
    %150 = arith.maximumf %148, %149 : vector<16x256xf32>
    %151 = arith.index_cast %c1_i32 : i32 to index
    %c0_47 = arith.constant 0 : index
    %c0_48 = arith.constant 0 : index
    %152 = vector.load %arg3[%151, %c0_47, %c0_48] : memref<2x64x16xf32, #tpu.memory_space<vmem>>, vector<1x64x16xf32>
    %153 = vector.shape_cast %152 : vector<1x64x16xf32> to vector<64x16xf32>
    %cst_49 = arith.constant dense<0.000000e+00> : vector<64x256xf32>
    %154 = tpu.matmul %153, %143, %cst_49 {dimension_numbers = #tpu.dot_dimension_numbers<[1], [0], [0], [1], [0, 0, 1, 1], [], []>} : vector<64x16xf32>, vector<16x256xf32>, vector<64x256xf32> -> vector<64x256xf32>
    %155 = vector.shape_cast %154 : vector<64x256xf32> to vector<4x16x256xf32>
    %156 = vector.shape_cast %150 : vector<16x256xf32> to vector<1x16x256xf32>
    %157 = vector.broadcast %156 : vector<1x16x256xf32> to vector<4x16x256xf32>
    %158 = arith.mulf %155, %157 : vector<4x16x256xf32>
    %cst_50 = arith.constant dense<0.000000e+00> : vector<4x256xf32>
    %159 = vector.multi_reduction <add>, %158, %cst_50 [1] : vector<4x16x256xf32> to vector<4x256xf32>
    %160 = arith.index_cast %c1_i32 : i32 to index
    %c0_51 = arith.constant 0 : index
    %c0_52 = arith.constant 0 : index
    %161 = vector.load %arg5[%160, %c0_51, %c0_52] : memref<2x4x256xf32, #tpu.memory_space<vmem>>, vector<1x4x256xf32>
    %162 = vector.shape_cast %161 : vector<1x4x256xf32> to vector<4x256xf32>
    %163 = vector.shape_cast %159 : vector<4x256xf32> to vector<1x4x256xf32>
    tpu.vector_store %arg5[%160, %c0_51, %c0_52], %163 {strides = array<i32>} : memref<2x4x256xf32, #tpu.memory_space<vmem>>, vector<1x4x256xf32>,
    %164 = arith.index_cast %c1_i32 : i32 to index
    %c0_53 = arith.constant 0 : index
    %c0_54 = arith.constant 0 : index
    %165 = vector.load %arg4[%164, %c0_53, %c0_54] : memref<2x4x256xf32, #tpu.memory_space<vmem>>, vector<1x4x256xf32>
    %166 = vector.shape_cast %165 : vector<1x4x256xf32> to vector<4x256xf32>
    %167 = arith.subf %159, %166 : vector<4x256xf32>
    %168 = arith.mulf %167, %167 : vector<4x256xf32>
    %169 = vector.shape_cast %168 : vector<4x256xf32> to vector<1x4x256xf32>
    %cst_55 = arith.constant dense<0.000000e+00> : vector<1xf32>
    %170 = vector.multi_reduction <add>, %169, %cst_55 [1, 2] : vector<1x4x256xf32> to vector<1xf32>
    %171 = vector.shape_cast %170 : vector<1xf32> to vector<1x1x1xf32>
    %172 = vector.extract %171[0, 0, 0] : f32 from vector<1x1x1xf32>
    %173 = vector.broadcast %172 : f32 to vector<1x1xf32>
    %174 = arith.addf %104, %173 : vector<1x1xf32>
    %c2_i32_56 = arith.constant 2 : i32
    %c0_57 = arith.constant 0 : index
    %c0_58 = arith.constant 0 : index
    %c0_59 = arith.constant 0 : index
    %175 = vector.load %arg6[%c0_57, %c0_58, %c0_59] : memref<1x1x1xf32, #tpu.memory_space<vmem>>, vector<1x1x1xf32>
    %176 = vector.shape_cast %175 : vector<1x1x1xf32> to vector<1x1xf32>
    %177 = vector.shape_cast %174 : vector<1x1xf32> to vector<1x1x1xf32>
    tpu.vector_store %arg6[%c0_57, %c0_58, %c0_59], %177 {strides = array<i32>} : memref<1x1x1xf32, #tpu.memory_space<vmem>>, vector<1x1x1xf32>,
    return
  }
  func.func @transform_0(%arg0: i32, %arg1: i32, %arg2: memref<2x2xf32, #tpu.memory_space<smem>>) -> (i32, i32, i32) {
    %c0_i32 = arith.constant 0 : i32
    %c0_i32_0 = arith.constant 0 : i32
    %c0_i32_1 = arith.constant 0 : i32
    return %arg0, %c0_i32, %c0_i32_0 : i32, i32, i32
  }
  func.func @transform_1(%arg0: i32, %arg1: i32, %arg2: memref<2x2xf32, #tpu.memory_space<smem>>) -> (i32, i32, i32) {
    %c0_i32 = arith.constant 0 : i32
    %c0_i32_0 = arith.constant 0 : i32
    return %arg0, %c0_i32, %arg1 : i32, i32, i32
  }
  func.func @transform_2(%arg0: i32, %arg1: i32, %arg2: memref<2x2xf32, #tpu.memory_space<smem>>) -> (i32, i32, i32) {
    %c0_i32 = arith.constant 0 : i32
    %c0_i32_0 = arith.constant 0 : i32
    return %arg0, %c0_i32, %arg1 : i32, i32, i32
  }
  func.func @transform_3(%arg0: i32, %arg1: i32, %arg2: memref<2x2xf32, #tpu.memory_space<smem>>) -> (i32, i32, i32) {
    %c1_i32 = arith.constant 1 : i32
    %0 = arith.muli %arg0, %c1_i32 : i32
    %1 = arith.addi %0, %arg1 : i32
    %c0_i32 = arith.constant 0 : i32
    %c0_i32_0 = arith.constant 0 : i32
    %c0_i32_1 = arith.constant 0 : i32
    return %1, %c0_i32, %c0_i32_0 : i32, i32, i32
  }
}

</mosaic_0001>

<bundles_post_ra>
// kernel: tpu_custom_call.1
= control target key start
LH: loop header
LB: loop body
LE: loop exit
PB: predicated region body
PF: predicated region fallthrough
CT: control target
= control target key end

     0   :  { %s1389_s0 = inlined_call_operand.vmem [shape: f32[2,2], index: 0, kind: input, shape index: {}]   ;;  %s1390_s1 = inlined_call_operand.vmem [shape: f32[2,64,16], index: 1, kind: input, shape index: {}]   ;;  %s1391_s2 = inlined_call_operand.vmem [shape: f32[2,4,256], index: 2, kind: input, shape index: {}]   ;;  %s1392_s3 = inlined_call_operand.hbm [shape: f32[2,4,256], index: 3, kind: output, shape index: {0}]   ;;  %s1393_s4 = inlined_call_operand.hbm [shape: f32[1,1,1], index: 4, kind: output, shape index: {1}]  }
   0x1   :  { %s10_s17 = sshll.u32 %s1389_s0, 4  ;;  %s11_s17 = int_to_ptr.vmem [resolvable:$true] %s10_s17 }
   0x2   :  { %s923_s18 = scalar_lea.vmem %s11_s17, 32  ;;  %p928_p1 = scmp.lt.s32.totalorder %s11_s17, %s11_s17 }
   0x3   :  { %p924_p0 = scmp.ne.s32.totalorder %s11_s17, %s923_s18  ;;  %p929_p2 = scmp.lt.s32.totalorder %s923_s18, %s923_s18 }
   0x5   :  { %p930_p3 = por %p929_p2, %p928_p1 }
   0x7   :  { %p931_p4 = pnand %p930_p3, %p924_p0 }
   0x9   :  { %934 = shalt.err (!%p931_p4)  }
   0xa   :  { %s985_s19 = smov [#allocation3]  }
   0xb   :  { %13 = dma.vmem_to_smem %s11_s17, 32, %s985_s19, [#allocation2] }
   0xc   :  { %979 = dma.done.wait [#allocation2], 32 }
   0xd   :  { %980 = vsyncadd [#allocation2], 4294967264 }
   0xe   :  { %15 = sfence }
   0xf   :  { %16 = vsyncpa [#allocation5], 0  ;;  %v23_v0 = vlaneseq  ;;  %v986_v1 = vmov 0.0  }
  0x10   :  { %229 = vmatprep.mubr.f32.mxu0 %v986_v1  ;;  %613 = vmatprep.mubr.f32.mxu1 %v986_v1 }
  0x11   :  { %v24_v2 = vand.u32 127, %v23_v0 }
  0x13   :  { %v25_v3 = vadd.s32 128, %v24_v2  ;;  %v26_v4 = vcvt.s32.f32 %v24_v2 }
  0x15   :  { %v27_v5 = vcvt.s32.f32 %v25_v3  ;;  %v33_v6 = vadd.f32 0.5, %v26_v4 }
  0x16   :  { %17 = vsyncpa [#allocation7], 0  ;;  %s867_s0 = sld [smem:[#allocation3 + $0x1]]  ;;  %s67_s21 = sld [smem:[#allocation3]]  ;;  %v61_v40 = vshrl.u32 %v23_v0, 7  ;;  %vm140_vm0 = vcmask 130048  }
  0x17   :  { %v34_v7 = vadd.f32 0.5, %v27_v5  ;;  %v36_v8 = vmul.f32 0.0625, %v33_v6  ;;  %s881_s20 = sld [smem:[#allocation3 + $0x81]]  ;;  %s880_s22 = sld [smem:[#allocation3 + $0x80]]  ;;  %vm363_vm1 = vcmask 1041409   ;;  %vm368_vm2 = vcmask 1042434  }
  0x18   :  { %v62_v49 = vadd.s32 8, %v61_v40  ;;  %v1053_v58 = vcvt.s32.f32 %v61_v40  ;;  %vm365_vm3 = vcmask 1045509   ;;  %vm373_vm4 = vcmask 1043459  }
  0x19   :  { %v37_v9 = vmul.f32 0.0625, %v34_v7  ;;  %v38_v10 = vfloor.f32 %v36_v8  ;;  %vm370_vm5 = vcmask 1046534   ;;  %vm434_vm6 = vcmask 1043456  }
  0x1a   :  { %v1055_v59 = vcvt.s32.f32 %v62_v49  ;;  %v132_v49 = vld [vmem:[%s1390_s1] sm:$0xff]  ;;  %vm375_vm7 = vcmask 1047559  }
  0x1b   :  { %v39_v11 = vfloor.f32 %v37_v9  ;;  %v40_v12 = vmul.f32 16.0, %v38_v10  ;;  %v52_v13 = vmul.f32 2.0, %v38_v10 }
  0x1c   :  { %v1025_v28 = vstv %s867_s0  ;;  %v1029_v32 = vstv %s67_s21 }
  0x1d   :  { %v41_v14 = vmul.f32 16.0, %v39_v11  ;;  %v53_v15 = vmul.f32 2.0, %v39_v11  ;;  %v42_v16 = vsub.f32 %v26_v4, %v40_v12  ;;  %v54_v17 = vadd.f32 1.0, %v52_v13 }
  0x1e   :  { %v1027_v29 = vstv %s881_s20  ;;  %v1031_v33 = vstv %s880_s22 }
  0x1f   :  { %v43_v18 = vsub.f32 %v27_v5, %v41_v14  ;;  %v55_v19 = vadd.f32 1.0, %v53_v15  ;;  %v44_v20 = vmul.f32 2.0, %v42_v16  ;;  %v56_v21 = vmul.f32 0.0625, %v54_v17 }
  0x21   :  { %v45_v22 = vmul.f32 2.0, %v43_v18  ;;  %v57_v23 = vmul.f32 0.0625, %v55_v19  ;;  %v46_v24 = vadd.f32 1.0, %v44_v20  ;;  %v1021_v25 = vadd.f32 -1.0, %v56_v21 }
  0x23   :  { %v47_v26 = vadd.f32 1.0, %v45_v22  ;;  %v1023_v27 = vadd.f32 -1.0, %v57_v23  ;;  %v48_v30 = vmul.f32 0.0625, %v46_v24  ;;  %v74_v35 = vmul.f32 %v1021_v25, %v1025_v28 }
  0x24   :  { %v458_v36 = vmul.f32 %v1021_v25, %v1027_v29 }
  0x25   :  { %v49_v31 = vmul.f32 0.0625, %v47_v26  ;;  %v1033_v34 = vadd.f32 -1.0, %v48_v30  ;;  %v75_v38 = vmul.f32 %v1023_v27, %v1025_v28  ;;  %v459_v39 = vmul.f32 %v1023_v27, %v1027_v29 }
  0x27   :  { %v1039_v37 = vadd.f32 -1.0, %v49_v31  ;;  %v71_v41 = vmul.f32 %v1033_v34, %v1029_v32  ;;  %v455_v42 = vmul.f32 %v1033_v34, %v1031_v33 }
  0x29   :  { %v72_v43 = vmul.f32 %v1039_v37, %v1029_v32  ;;  %v456_v44 = vmul.f32 %v1039_v37, %v1031_v33  ;;  %v76_v45 = vsub.f32 %v71_v41, %v74_v35  ;;  %v460_v46 = vsub.f32 %v455_v42, %v458_v36 }
  0x2b   :  { %v77_v47 = vsub.f32 %v72_v43, %v75_v38  ;;  %v461_v48 = vsub.f32 %v456_v44, %v459_v39  ;;  %v84_v50 = vadd.f32 1.0, %v76_v45  ;;  %v468_v51 = vadd.f32 1.0, %v460_v46 }
  0x2d   :  { %v85_v52 = vadd.f32 1.0, %v77_v47  ;;  %v469_v53 = vadd.f32 1.0, %v461_v48  ;;  %v86_v54 = vmul.f32 16.0, %v84_v50  ;;  %v470_v55 = vmul.f32 16.0, %v468_v51  ;;  %v886_v50 = vld [vmem:[%s1390_s1 + $0x40] sm:$0xff]  ;;  %v133_v51 = vld [vmem:[%s1390_s1 + $0x8] sm:$0xff] }
  0x2f   :  { %v87_v56 = vmul.f32 16.0, %v85_v52  ;;  %v471_v57 = vmul.f32 16.0, %v469_v53  ;;  %v868_v60 = vadd.f32 -1.0, %v86_v54  ;;  %v882_v61 = vadd.f32 -1.0, %v470_v55  ;;  %v887_v52 = vld [vmem:[%s1390_s1 + $0x48] sm:$0xff]  ;;  %v134_v53 = vld [vmem:[%s1390_s1 + $0x10] sm:$0xff] }
  0x30   :  { %v888_v54 = vld [vmem:[%s1390_s1 + $0x50] sm:$0xff]  ;;  %v135_v55 = vld [vmem:[%s1390_s1 + $0x18] sm:$0xff] }
  0x31   :  { %v869_v62 = vadd.f32 -1.0, %v87_v56  ;;  %v883_v63 = vadd.f32 -1.0, %v471_v57  ;;  %v90_v0 = vmul.f32 0.5, %v868_v60  ;;  %v474_v2 = vmul.f32 0.5, %v882_v61  ;;  %v889_v56 = vld [vmem:[%s1390_s1 + $0x58] sm:$0xff]  ;;  %v136_v57 = vld [vmem:[%s1390_s1 + $0x20] sm:$0xff] }
  0x32   :  { %v890_v60 = vld [vmem:[%s1390_s1 + $0x60] sm:$0xff]  ;;  %v137_v61 = vld [vmem:[%s1390_s1 + $0x28] sm:$0xff] }
  0x33   :  { %v91_v3 = vmul.f32 0.5, %v869_v62  ;;  %v475_v4 = vmul.f32 0.5, %v883_v63  ;;  %v100_v5 = vsub.f32 %v1053_v58, %v90_v0  ;;  %v102_v6 = vsub.f32 %v1055_v59, %v90_v0  ;;  %v891_v62 = vld [vmem:[%s1390_s1 + $0x68] sm:$0xff]  ;;  %v138_v63 = vld [vmem:[%s1390_s1 + $0x30] sm:$0xff] }
  0x34   :  { %v484_v7 = vsub.f32 %v1053_v58, %v474_v2  ;;  %v486_v8 = vsub.f32 %v1055_v59, %v474_v2  ;;  %v892_v0 = vld [vmem:[%s1390_s1 + $0x70] sm:$0xff]  ;;  %v139_v2 = vld [vmem:[%s1390_s1 + $0x38] sm:$0xff] }
  0x35   :  { %v101_v9 = vsub.f32 %v1053_v58, %v91_v3  ;;  %v103_v10 = vsub.f32 %v1055_v59, %v91_v3  ;;  %v485_v11 = vsub.f32 %v1053_v58, %v475_v4  ;;  %v487_v12 = vsub.f32 %v1055_v59, %v475_v4  ;;  %v893_v3 = vld [vmem:[%s1390_s1 + $0x78] sm:$0xff] }
  0x36   :  { %v104_v13 = vand.u32 2147483647, %v100_v5  ;;  %v106_v14 = vand.u32 2147483647, %v102_v6  ;;  %v488_v15 = vand.u32 2147483647, %v484_v7  ;;  %v78_v4 = vmul.f32 %v1033_v34, %v1025_v28 }
  0x37   :  { %v105_v16 = vand.u32 2147483647, %v101_v9  ;;  %v107_v17 = vand.u32 2147483647, %v103_v10  ;;  %v489_v18 = vand.u32 2147483647, %v485_v11  ;;  %v80_v5 = vmul.f32 %v1021_v25, %v1029_v32 }
  0x38   :  { %v491_v19 = vand.u32 2147483647, %v487_v12  ;;  %v108_v20 = vsub.f32 1.0, %v104_v13  ;;  %v110_v21 = vsub.f32 1.0, %v106_v14  ;;  %v490_v22 = vand.u32 2147483647, %v486_v8 }
  0x39   :  { %v109_v23 = vsub.f32 1.0, %v105_v16  ;;  %v111_v24 = vsub.f32 1.0, %v107_v17  ;;  %v493_v26 = vsub.f32 1.0, %v489_v18  ;;  %v492_v30 = vsub.f32 1.0, %v488_v15 }
  0x3a   :  { %v495_v31 = vsub.f32 1.0, %v491_v19  ;;  %v112_v35 = vmax.f32 %v108_v20, 0.0  ;;  %v114_v36 = vmax.f32 %v110_v21, 0.0  ;;  %v494_v38 = vsub.f32 1.0, %v490_v22 }
  0x3b   :  { %v113_v39 = vmax.f32 %v109_v23, 0.0  ;;  %v115_v40 = vmax.f32 %v111_v24, 0.0  ;;  %v497_v41 = vmax.f32 %v493_v26, 0.0  ;;  %v496_v42 = vmax.f32 %v492_v30, 0.0 }
  0x3c   :  { %v499_v43 = vmax.f32 %v495_v31, 0.0  ;;  %v905_v44 = vpack.c.bf16 %v114_v36, %v112_v35  ;;  %v498_v45 = vmax.f32 %v494_v38, 0.0  ;;  %v462_v6 = vmul.f32 %v1033_v34, %v1027_v29 }
  0x3d   :  { %v903_v46 = vpack.c.bf16 %v115_v40, %v113_v39  ;;  %v463_v7 = vmul.f32 %v1039_v37, %v1027_v29  ;;  %v465_v8 = vmul.f32 %v1023_v27, %v1031_v33  ;;  %v79_v9 = vmul.f32 %v1039_v37, %v1025_v28 }
  0x3e   :  { %v907_v47 = vpack.c.bf16 %v499_v43, %v497_v41  ;;  %v909_v48 = vpack.c.bf16 %v498_v45, %v496_v42  ;;  %v81_v10 = vmul.f32 %v1023_v27, %v1029_v32  ;;  %v82_v11 = vadd.f32 %v80_v5, %v78_v4 }
  0x3f   :  { %904 = vmatprep.subr.bf16.mxu0 %v903_v46  ;;  %v467_v13 = vadd.f32 %v465_v8, %v463_v7 }
  0x40   :  { %908 = vmatprep.subr.bf16.mxu1 %v907_v47  ;;  %906 = vmatpush1.bf16.msra.mxu0 %v905_v44  ;;  %v83_v14 = vadd.f32 %v81_v10, %v79_v9  ;;  %v92_v34 = vadd.f32 1.0, %v82_v11 }
  0x41   :  { %910 = vmatpush1.bf16.msra.mxu1 %v909_v48  ;;  %v477_v16 = vadd.f32 1.0, %v467_v13 }
  0x42   :  { %v94_v17 = vmul.f32 16.0, %v92_v34 }
  0x43   :  { %872 = vmatmul.mubr.msk.f32.vlgmr.msra.gmra.mrb[0].mxu0 %vm140_vm0, %v132_v49  ;;  %v479_v29 = vmul.f32 16.0, %v477_v16 }
  0x44   :  { %894 = vmatmul.mubr.msk.f32.vlgmr.msra.gmra.mrb[0].mxu1 %vm140_vm0, %v886_v50  ;;  %235 = vmatprep.mubr.f32.mxu0 %v986_v1  ;;  %v870_v20 = vadd.f32 -1.0, %v94_v17 }
  0x45   :  { %619 = vmatprep.mubr.f32.mxu1 %v986_v1  ;;  %v885_v21 = vadd.f32 -1.0, %v479_v29 }
  0x46   :  { %v98_v28 = vmul.f32 0.5, %v870_v20 }
  0x47   :  { %873 = vmatmul.mubr.msk.f32.gmra.mrb[2].mxu0 %vm140_vm0, %v133_v51  ;;  %v483_v23 = vmul.f32 0.5, %v885_v21 }
  0x48   :  { %895 = vmatmul.mubr.msk.f32.gmra.mrb[2].mxu1 %vm140_vm0, %v887_v52  ;;  %241 = vmatprep.mubr.f32.mxu0 %v986_v1  ;;  %v116_v32 = vsub.f32 %v1053_v58, %v98_v28  ;;  %v118_v30 = vsub.f32 %v1055_v59, %v98_v28 }
  0x49   :  { %625 = vmatprep.mubr.f32.mxu1 %v986_v1  ;;  %v501_v26 = vsub.f32 %v1053_v58, %v483_v23  ;;  %v503_v38 = vsub.f32 %v1055_v59, %v483_v23 }
  0x4a   :  { %v120_v39 = vand.u32 2147483647, %v116_v32  ;;  %v122_v42 = vand.u32 2147483647, %v118_v30 }
  0x4b   :  { %874 = vmatmul.mubr.msk.f32.gmra.mrb[4].mxu0 %vm140_vm0, %v134_v53  ;;  %v505_v41 = vand.u32 2147483647, %v501_v26  ;;  %v507_v46 = vand.u32 2147483647, %v503_v38 }
  0x4c   :  { %896 = vmatmul.mubr.msk.f32.gmra.mrb[4].mxu1 %vm140_vm0, %v888_v54  ;;  %247 = vmatprep.mubr.f32.mxu0 %v986_v1  ;;  %v124_v47 = vsub.f32 1.0, %v120_v39  ;;  %v126_v50 = vsub.f32 1.0, %v122_v42 }
  0x4d   :  { %631 = vmatprep.mubr.f32.mxu1 %v986_v1  ;;  %v509_v49 = vsub.f32 1.0, %v505_v41  ;;  %v511_v53 = vsub.f32 1.0, %v507_v46 }
  0x4e   :  { %v1167_v54 = vmax.f32 %v124_v47, 0.0 }
  0x4f   :  { %875 = vmatmul.mubr.msk.f32.gmra.mrb[6].mxu0 %vm140_vm0, %v135_v55  ;;  %v1191_v5 = vmax.f32 %v511_v53, 0.0 }
  0x50   :  { %897 = vmatmul.mubr.msk.f32.gmra.mrb[6].mxu1 %vm140_vm0, %v889_v56  ;;  %253 = vmatprep.mubr.f32.mxu0 %v986_v1 }
  0x51   :  { %637 = vmatprep.mubr.f32.mxu1 %v986_v1 }
  0x53   :  { %876 = vmatmul.mubr.msk.f32.gmra.mrb[8].mxu0 %vm140_vm0, %v136_v57 }
  0x54   :  { %898 = vmatmul.mubr.msk.f32.gmra.mrb[8].mxu1 %vm140_vm0, %v890_v60  ;;  %259 = vmatprep.mubr.f32.mxu0 %v986_v1  ;;  %v1171_v60 = vmax.f32 %v509_v49, 0.0 }
  0x55   :  { %643 = vmatprep.mubr.f32.mxu1 %v986_v1 }
  0x57   :  { %877 = vmatmul.mubr.msk.f32.gmra.mrb[10].mxu0 %vm140_vm0, %v137_v61  ;;  %v1173_v61 = vmax.f32 %v126_v50, 0.0 }
  0x58   :  { %899 = vmatmul.mubr.msk.f32.gmra.mrb[10].mxu1 %vm140_vm0, %v891_v62  ;;  %265 = vmatprep.mubr.f32.mxu0 %v986_v1  ;;  %v1178_v62 = vld [vmem:[%s1391_s2] sm:$0xff] }
  0x59   :  { %649 = vmatprep.mubr.f32.mxu1 %v986_v1  ;;  %v1196_v7 = vcombine.high %v1178_v62, %v1178_v62  ;;  %v382_v9 = vrot.slane %v1178_v62, 1  ;;  %v384_v23 = vrot.slane %v1178_v62, 2 }
  0x5b   :  { %878 = vmatmul.mubr.msk.f32.gmra.mrb[12].mxu0 %vm140_vm0, %v138_v63  ;;  %v1183_v63 = vld [vmem:[%s1391_s2 + $0x8] sm:$0xff]  ;;  %v385_v30 = vrot.slane %v1196_v7, 2  ;;  %v387_v39 = vrot.slane %v1196_v7, 3  ;;  %s987_s2 = smov [#allocation4]  }
  0x5c   :  { %900 = vmatmul.mubr.msk.f32.gmra.mrb[12].mxu1 %vm140_vm0, %v892_v0  ;;  %271 = vmatprep.mubr.f32.mxu0 %v986_v1  ;;  %v1200_v8 = vcombine.high %v1183_v63, %v1183_v63  ;;  %v762_v34 = vrot.slane %v1183_v63, 1  ;;  %s835_s5 = sshll.u32 %s987_s2, 4  ;;  %s836_s5 = int_to_ptr.vmem [resolvable:$true] %s835_s5 }
  0x5d   :  { %655 = vmatprep.mubr.f32.mxu1 %v986_v1  ;;  %v464_v1 = vmul.f32 %v1021_v25, %v1031_v33  ;;  %v93_v25 = vadd.f32 1.0, %v83_v14  ;;  %s935_s6 = scalar_lea.vmem %s836_s5, 256  ;;  %p940_p6 = scmp.lt.s32.totalorder %s836_s5, %s836_s5 }
  0x5e   :  { %v763_v20 = vrot.slane %v1200_v8, 1  ;;  %p936_p5 = scmp.ne.s32.totalorder %s836_s5, %s935_s6  ;;  %p941_p7 = scmp.lt.s32.totalorder %s935_s6, %s935_s6 }
  0x5f   :  { %879 = vmatmul.mubr.msk.f32.gmra.mrb[14].mxu0 %vm140_vm0, %v139_v2  ;;  %v466_v12 = vadd.f32 %v464_v1, %v462_v6  ;;  %v95_v19 = vmul.f32 16.0, %v93_v25 }
  0x60   :  { %901 = vmatmul.mubr.msk.f32.gmra.mrb[14].mxu1 %vm140_vm0, %v893_v3  ;;  %p942_p8 = por %p941_p7, %p940_p6 }
  0x61   :  { %v476_v15 = vadd.f32 1.0, %v466_v12  ;;  %v871_v22 = vadd.f32 -1.0, %v95_v19 }
  0x62   :  { %p943_p9 = pnand %p942_p8, %p936_p5 }
  0x63   :  { %v478_v18 = vmul.f32 16.0, %v476_v15  ;;  %v99_v27 = vmul.f32 0.5, %v871_v22 }
  0x65   :  { %v884_v33 = vadd.f32 -1.0, %v478_v18  ;;  %v117_v31 = vsub.f32 %v1053_v58, %v99_v27  ;;  %v119_v36 = vsub.f32 %v1055_v59, %v99_v27  ;;  %v383_v18 = vrot.slane %v1196_v7, 1 }
  0x67   :  { %v482_v37 = vmul.f32 0.5, %v884_v33  ;;  %v121_v43 = vand.u32 2147483647, %v117_v31  ;;  %v123_v45 = vand.u32 2147483647, %v119_v36  ;;  %v764_v33 = vrot.slane %v1183_v63, 2 }
  0x68   :  { %v386_v31 = vrot.slane %v1178_v62, 3 }
  0x69   :  { %v500_v24 = vsub.f32 %v1053_v58, %v482_v37  ;;  %v502_v35 = vsub.f32 %v1055_v59, %v482_v37  ;;  %v125_v51 = vsub.f32 1.0, %v121_v43  ;;  %v127_v52 = vsub.f32 1.0, %v123_v45 }
  0x6a   :  { %v765_v37 = vrot.slane %v1200_v8, 2 }
  0x6b   :  { %v504_v40 = vand.u32 2147483647, %v500_v24  ;;  %v506_v44 = vand.u32 2147483647, %v502_v35  ;;  %v1185_v0 = vmax.f32 %v125_v51, 0.0  ;;  %v1189_v4 = vmax.f32 %v127_v52, 0.0 }
  0x6d   :  { %v508_v48 = vsub.f32 1.0, %v504_v40  ;;  %v510_v58 = vsub.f32 1.0, %v506_v44  ;;  %v766_v40 = vrot.slane %v1183_v63, 3  ;;  %v767_v44 = vrot.slane %v1200_v8, 3 }
  0x6f   :  { %v1169_v59 = vmax.f32 %v508_v48, 0.0  ;;  %v1187_v3 = vmax.f32 %v510_v58, 0.0 }
 0x116   :  { %v231_v55 = vpop.f32.mrb[0].mxu0 }
 0x117   :  { %v233_v56 = vpop.f32.mrb[1].mxu0  ;;  %v615_v57 = vpop.f32.mrb[0].mxu1  ;;  %v278_v10 = vmul.f32 %v231_v55, %v1167_v54 }
 0x118   :  { %v617_v2 = vpop.f32.mrb[1].mxu1  ;;  %v662_v6 = vmul.f32 %v615_v57, %v1169_v59  ;;  %v279_v15 = vmul.f32 %v233_v56, %v1185_v0 }
 0x119   :  { %v663_v11 = vmul.f32 %v617_v2, %v1171_v60 }
 0x11a   :  { %v237_v1 = vpop.f32.mrb[2].mxu0 }
 0x11b   :  { %v280_v12 = vmul.f32 %v237_v1, %v1173_v61  ;;  %v621_v13 = vpop.f32.mrb[2].mxu1  ;;  %v239_v14 = vpop.f32.mrb[3].mxu0 }
 0x11c   :  { %v664_v16 = vmul.f32 %v621_v13, %v1187_v3  ;;  %v281_v25 = vmul.f32 %v239_v14, %v1189_v4  ;;  %v623_v17 = vpop.f32.mrb[3].mxu1 }
 0x11d   :  { %v294_v29 = vadd.f32 %v280_v12, %v278_v10  ;;  %v665_v19 = vmul.f32 %v623_v17, %v1191_v5 }
 0x11e   :  { %v678_v21 = vadd.f32 %v664_v16, %v662_v6  ;;  %v301_v22 = vadd.f32 %v281_v25, %v279_v15  ;;  %v243_v28 = vpop.f32.mrb[4].mxu0 }
 0x11f   :  { %v295_v27 = vrot.slane %v294_v29, 4  ;;  %v685_v32 = vadd.f32 %v665_v19, %v663_v11  ;;  %v245_v24 = vpop.f32.mrb[5].mxu0  ;;  %v627_v26 = vpop.f32.mrb[4].mxu1  ;;  %v282_v43 = vmul.f32 %v243_v28, %v1167_v54 }
 0x120   :  { %v679_v35 = vrot.slane %v678_v21, 4  ;;  %v302_v36 = vrot.slane %v301_v22, 4  ;;  %v629_v38 = vpop.f32.mrb[5].mxu1  ;;  %v283_v47 = vmul.f32 %v245_v24, %v1185_v0  ;;  %v666_v48 = vmul.f32 %v627_v26, %v1169_v59 }
 0x121   :  { %v296_v41 = vadd.f32 %v295_v27, %v294_v29  ;;  %v686_v42 = vrot.slane %v685_v32, 4  ;;  %v667_v58 = vmul.f32 %v629_v38, %v1171_v60 }
 0x122   :  { %v680_v45 = vadd.f32 %v679_v35, %v678_v21  ;;  %v303_v46 = vadd.f32 %v302_v36, %v301_v22  ;;  %v249_v49 = vpop.f32.mrb[6].mxu0 }
 0x123   :  { %v297_v50 = vrot.slane %v296_v41, 2  ;;  %v687_v51 = vadd.f32 %v686_v42, %v685_v32  ;;  %v284_v52 = vmul.f32 %v249_v49, %v1173_v61  ;;  %v633_v53 = vpop.f32.mrb[6].mxu1  ;;  %v251_v55 = vpop.f32.mrb[7].mxu0 }
 0x124   :  { %v681_v56 = vrot.slane %v680_v45, 2  ;;  %v304_v57 = vrot.slane %v303_v46, 2  ;;  %v668_v2 = vmul.f32 %v633_v53, %v1187_v3  ;;  %v285_v6 = vmul.f32 %v251_v55, %v1189_v4  ;;  %v635_v1 = vpop.f32.mrb[7].mxu1 }
 0x125   :  { %v298_v10 = vadd.f32 %v297_v50, %v296_v41  ;;  %v688_v11 = vrot.slane %v687_v51, 2  ;;  %v308_v12 = vadd.f32 %v284_v52, %v282_v43  ;;  %v669_v13 = vmul.f32 %v635_v1, %v1191_v5 }
 0x126   :  { %v682_v14 = vadd.f32 %v681_v56, %v680_v45  ;;  %v305_v15 = vadd.f32 %v304_v57, %v303_v46  ;;  %v692_v16 = vadd.f32 %v668_v2, %v666_v48  ;;  %v315_v25 = vadd.f32 %v285_v6, %v283_v47  ;;  %v255_v17 = vpop.f32.mrb[8].mxu0 }
 0x127   :  { %v299_v29 = vrot.slane %v298_v10, 1  ;;  %v689_v19 = vadd.f32 %v688_v11, %v687_v51  ;;  %v309_v21 = vrot.slane %v308_v12, 4  ;;  %v699_v22 = vadd.f32 %v669_v13, %v667_v58  ;;  %v257_v28 = vpop.f32.mrb[9].mxu0  ;;  %v639_v27 = vpop.f32.mrb[8].mxu1 }
 0x128   :  { %v683_v32 = vrot.slane %v682_v14, 1  ;;  %v306_v24 = vrot.slane %v305_v15, 1  ;;  %v693_v26 = vrot.slane %v692_v16, 4  ;;  %v316_v35 = vrot.slane %v315_v25, 4  ;;  %v641_v36 = vpop.f32.mrb[9].mxu1 }
 0x129   :  { %v1229_v38 = vadd.f32 %v299_v29, %v298_v10  ;;  %v690_v41 = vrot.slane %v689_v19, 1  ;;  %v310_v42 = vadd.f32 %v309_v21, %v308_v12  ;;  %v700_v43 = vrot.slane %v699_v22, 4 }
 0x12a   :  { %v1231_v45 = vadd.f32 %v683_v32, %v682_v14  ;;  %v1233_v46 = vadd.f32 %v306_v24, %v305_v15  ;;  %v694_v47 = vadd.f32 %v693_v26, %v692_v16  ;;  %v317_v48 = vadd.f32 %v316_v35, %v315_v25  ;;  %v261_v49 = vpop.f32.mrb[10].mxu0 }
 0x12b   :  { %v1237_v50 = vsub.f32 %v1229_v38, %v1178_v62  ;;  %v1239_v51 = vadd.f32 %v690_v41, %v689_v19  ;;  %v311_v58 = vrot.slane %v310_v42, 2  ;;  %v701_v52 = vadd.f32 %v700_v43, %v699_v22  ;;  %v645_v53 = vpop.f32.mrb[10].mxu1  ;;  %v263_v55 = vpop.f32.mrb[11].mxu0 }
 0x12c   :  { %v776_v56 = vsub.f32 %v1231_v45, %v1183_v63  ;;  %v358_v57 = vcombine.low %v1229_v38, %v1233_v46  ;;  %v1247_v2 = vsub.f32 %v1233_v46, %v1196_v7  ;;  %v695_v6 = vrot.slane %v694_v47, 2  ;;  %v647_v1 = vpop.f32.mrb[11].mxu1 }
 0x12d   :  { %v742_v10 = vcombine.low %v1231_v45, %v1239_v51  ;;  %v777_v11 = vsub.f32 %v1239_v51, %v1200_v8  ;;  %v312_v12 = vadd.f32 %v311_v58, %v310_v42  ;;  %v318_v13 = vrot.slane %v317_v48, 2 }
 0x12e   :  { %v1253_v14 = vmul.f32 %v776_v56, %v776_v56  ;;  %v696_v15 = vadd.f32 %v695_v6, %v694_v47  ;;  %v702_v16 = vrot.slane %v701_v52, 2  ;;  %v286_v25 = vmul.f32 %v255_v17, %v1167_v54  ;;  %v267_v29 = vpop.f32.mrb[12].mxu0 }
 0x12f   :  { %v1256_v19 = vmul.f32 %v777_v11, %v777_v11  ;;  %v313_v21 = vrot.slane %v312_v12, 1  ;;  %v319_v22 = vadd.f32 %v318_v13, %v317_v48  ;;  %v287_v32 = vmul.f32 %v257_v28, %v1185_v0  ;;  %v269_v24 = vpop.f32.mrb[13].mxu0  ;;  %v651_v26 = vpop.f32.mrb[12].mxu1 }
 0x130   :  { %v697_v35 = vrot.slane %v696_v15, 1  ;;  %v703_v38 = vadd.f32 %v702_v16, %v701_v52  ;;  %v670_v41 = vmul.f32 %v639_v27, %v1169_v59  ;;  %v671_v42 = vmul.f32 %v641_v36, %v1171_v60  ;;  %v653_v43 = vpop.f32.mrb[13].mxu1 }
 0x131   :  { %v314_v45 = vadd.f32 %v313_v21, %v312_v12  ;;  %v320_v46 = vrot.slane %v319_v22, 1  ;;  %v288_v17 = vmul.f32 %v261_v49, %v1173_v61  ;;  %v672_v47 = vmul.f32 %v645_v53, %v1187_v3 }
 0x132   :  { %v698_v51 = vadd.f32 %v697_v35, %v696_v15  ;;  %v704_v58 = vrot.slane %v703_v38, 1  ;;  %v289_v48 = vmul.f32 %v263_v55, %v1189_v4  ;;  %v673_v28 = vmul.f32 %v647_v1, %v1191_v5  ;;  %v273_v56 = vpop.f32.mrb[14].mxu0 }
 0x133   :  { %v398_v52 = vsub.f32 %v314_v45, %v382_v9  ;;  %v321_v27 = vadd.f32 %v320_v46, %v319_v22  ;;  %v322_v6 = vadd.f32 %v288_v17, %v286_v25  ;;  %v706_v36 = vadd.f32 %v672_v47, %v670_v41  ;;  %v657_v11 = vpop.f32.mrb[14].mxu1  ;;  %v275_v12 = vpop.f32.mrb[15].mxu0 }
 0x134   :  { %v778_v49 = vsub.f32 %v698_v51, %v762_v34  ;;  %v705_v13 = vadd.f32 %v704_v58, %v703_v38  ;;  %v329_v53 = vadd.f32 %v289_v48, %v287_v32  ;;  %v713_v15 = vadd.f32 %v673_v28, %v671_v42  ;;  %v659_v16 = vpop.f32.mrb[15].mxu1 }
 0x135   :  { %v1269_v21 = vmul.f32 %v398_v52, %v398_v52  ;;  %v359_v55 = vcombine.low %v314_v45, %v321_v27  ;;  %v399_v1 = vsub.f32 %v321_v27, %v383_v18  ;;  %v323_v35 = vrot.slane %v322_v6, 4 }
 0x136   :  { %v1273_v9 = vmul.f32 %v778_v49, %v778_v49  ;;  %v743_v25 = vcombine.low %v698_v51, %v705_v13  ;;  %v779_v22 = vsub.f32 %v705_v13, %v763_v20  ;;  %v707_v41 = vrot.slane %v706_v36, 4 }
 0x137   :  { %v1277_v46 = vrot.slane %v359_v55, 7  ;;  %v1279_v34 = vmul.f32 %v399_v1, %v399_v1  ;;  %v324_v32 = vadd.f32 %v323_v35, %v322_v6  ;;  %v330_v38 = vrot.slane %v329_v53, 4 }
 0x138   :  { %v800_v42 = vrot.slane %v1273_v9, 7  ;;  %v1282_v45 = vrot.slane %v743_v25, 7  ;;  %v1284_v17 = vmul.f32 %v779_v22, %v779_v22  ;;  %v708_v18 = vadd.f32 %v707_v41, %v706_v36 }
 0x139   :  { %v1288_v47 = vsel %vm363_vm1, %v1277_v46, %v358_v57  ;;  %v325_v51 = vrot.slane %v324_v32, 2  ;;  %v331_v20 = vadd.f32 %v330_v38, %v329_v53  ;;  %v714_v58 = vrot.slane %v713_v15, 4 }
 0x13a   :  { %v1292_v48 = vsel %vm363_vm1, %v1282_v45, %v742_v10  ;;  %v806_v28 = vrot.slane %v1284_v17, 7  ;;  %v709_v52 = vrot.slane %v708_v18, 2  ;;  %v290_v27 = vmul.f32 %v267_v29, %v1167_v54 }
 0x13b   :  { %v326_v6 = vadd.f32 %v325_v51, %v324_v32  ;;  %v332_v49 = vrot.slane %v331_v20, 2  ;;  %v715_v13 = vadd.f32 %v714_v58, %v713_v15  ;;  %v291_v36 = vmul.f32 %v269_v24, %v1185_v0 }
 0x13c   :  { %v710_v55 = vadd.f32 %v709_v52, %v708_v18  ;;  %v674_v57 = vmul.f32 %v651_v26, %v1169_v59  ;;  %v675_v53 = vmul.f32 %v653_v43, %v1171_v60  ;;  %v292_v1 = vmul.f32 %v273_v56, %v1173_v61 }
 0x13d   :  { %v327_v35 = vrot.slane %v326_v6, 1  ;;  %v333_v10 = vadd.f32 %v332_v49, %v331_v20  ;;  %v716_v25 = vrot.slane %v715_v13, 2  ;;  %v676_v22 = vmul.f32 %v657_v11, %v1187_v3 }
 0x13e   :  { %v711_v41 = vrot.slane %v710_v55, 1  ;;  %v336_v38 = vadd.f32 %v292_v1, %v290_v27  ;;  %v293_v54 = vmul.f32 %v275_v12, %v1189_v4  ;;  %v677_v29 = vmul.f32 %v659_v16, %v1191_v5 }
 0x13f   :  { %v328_v15 = vadd.f32 %v327_v35, %v326_v6  ;;  %v334_v0 = vrot.slane %v333_v10, 1  ;;  %v717_v24 = vadd.f32 %v716_v25, %v715_v13  ;;  %v720_v32 = vadd.f32 %v676_v22, %v674_v57 }
 0x140   :  { %v712_v59 = vadd.f32 %v711_v41, %v710_v55  ;;  %v337_v26 = vrot.slane %v336_v38, 4  ;;  %v343_v60 = vadd.f32 %v293_v54, %v291_v36  ;;  %v727_v43 = vadd.f32 %v677_v29, %v675_v53 }
 0x141   :  { %v335_v61 = vadd.f32 %v334_v0, %v333_v10  ;;  %v718_v56 = vrot.slane %v717_v24, 1  ;;  %v721_v18 = vrot.slane %v720_v32, 4  ;;  %v400_v3 = vsub.f32 %v328_v15, %v384_v23 }
 0x142   :  { %v780_v4 = vsub.f32 %v712_v59, %v764_v33  ;;  %v338_v11 = vadd.f32 %v337_v26, %v336_v38  ;;  %v344_v5 = vrot.slane %v343_v60, 4  ;;  %v728_v12 = vrot.slane %v727_v43, 4 }
 0x143   :  { %v360_v16 = vcombine.low %v328_v15, %v335_v61  ;;  %v719_v51 = vadd.f32 %v718_v56, %v717_v24  ;;  %v722_v20 = vadd.f32 %v721_v18, %v720_v32  ;;  %v401_v58 = vsub.f32 %v335_v61, %v385_v30 }
 0x144   :  { %v339_v52 = vrot.slane %v338_v11, 2  ;;  %v345_v27 = vadd.f32 %v344_v5, %v343_v60  ;;  %v729_v6 = vadd.f32 %v728_v12, %v727_v43  ;;  %v404_v49 = vmul.f32 %v1237_v50, %v1237_v50 }
 0x145   :  { %v367_v13 = vrot.slane %v360_v16, 6  ;;  %v744_v23 = vcombine.low %v712_v59, %v719_v51  ;;  %v781_v33 = vsub.f32 %v719_v51, %v765_v37  ;;  %v723_v36 = vrot.slane %v722_v20, 2 }
 0x146   :  { %v340_v55 = vadd.f32 %v339_v52, %v338_v11  ;;  %v346_v57 = vrot.slane %v345_v27, 2  ;;  %v730_v53 = vrot.slane %v729_v6, 2  ;;  %v405_v1 = vmul.f32 %v1247_v2, %v1247_v2 }
 0x147   :  { %v1315_v30 = vrot.slane %v744_v23, 6  ;;  %v724_v35 = vadd.f32 %v723_v36, %v722_v20  ;;  %v408_v10 = vmul.f32 %v400_v3, %v400_v3  ;;  %v409_v25 = vmul.f32 %v401_v58, %v401_v58 }
 0x148   :  { %v341_v50 = vrot.slane %v340_v55, 1  ;;  %v347_v22 = vadd.f32 %v346_v57, %v345_v27  ;;  %v731_v41 = vadd.f32 %v730_v53, %v729_v6  ;;  %v420_v37 = vrot.slane %v1269_v21, 7 }
 0x149   :  { %v725_v38 = vrot.slane %v724_v35, 1  ;;  %v422_v54 = vrot.slane %v408_v10, 6  ;;  %v426_v29 = vrot.slane %v1279_v34, 7  ;;  %v428_v15 = vrot.slane %v409_v25, 6 }
 0x14a   :  { %v342_v2 = vadd.f32 %v341_v50, %v340_v55  ;;  %v348_v0 = vrot.slane %v347_v22, 1  ;;  %v732_v24 = vrot.slane %v731_v41, 1  ;;  %v421_v32 = vsel %vm363_vm1, %v420_v37, %v404_v49 }
 0x14b   :  { %v726_v59 = vadd.f32 %v725_v38, %v724_v35  ;;  %v423_v26 = vsel %vm368_vm2, %v422_v54, %v421_v32  ;;  %v427_v60 = vsel %vm363_vm1, %v426_v29, %v405_v1  ;;  %v788_v43 = vmul.f32 %v780_v4, %v780_v4 }
 0x14c   :  { %v349_v61 = vadd.f32 %v348_v0, %v347_v22  ;;  %v733_v21 = vadd.f32 %v732_v24, %v731_v41  ;;  %v402_v56 = vsub.f32 %v342_v2, %v386_v31  ;;  %v429_v34 = vsel %vm368_vm2, %v428_v15, %v427_v60 }
 0x14d   :  { %v782_v18 = vsub.f32 %v726_v59, %v766_v40  ;;  %v789_v3 = vmul.f32 %v781_v33, %v781_v33  ;;  %v801_v11 = vsel %vm363_vm1, %v800_v42, %v1253_v14  ;;  %v802_v5 = vrot.slane %v788_v43, 6 }
 0x14e   :  { %v361_v12 = vcombine.low %v342_v2, %v349_v61  ;;  %v745_v16 = vcombine.low %v726_v59, %v733_v21  ;;  %v403_v4 = vsub.f32 %v349_v61, %v387_v39  ;;  %v410_v51 = vmul.f32 %v402_v56, %v402_v56 }
 0x14f   :  { %v783_v62 = vsub.f32 %v733_v21, %v767_v44  ;;  %v790_v31 = vmul.f32 %v782_v18, %v782_v18  ;;  %v803_v63 = vsel %vm368_vm2, %v802_v5, %v801_v11  ;;  %v807_v40 = vsel %vm363_vm1, %v806_v28, %v1256_v19 }
 0x150   :  { %v411_v9 = vmul.f32 %v403_v4, %v403_v4  ;;  %v424_v14 = vrot.slane %v410_v51, 5  ;;  %v808_v42 = vrot.slane %v789_v3, 6  ;;  %v366_v7 = vsel %vm365_vm3, %v1277_v46, %v1288_v47 }
 0x151   :  { %v791_v39 = vmul.f32 %v783_v62, %v783_v62  ;;  %v804_v20 = vrot.slane %v790_v31, 5  ;;  %v369_v8 = vsel %vm368_vm2, %v367_v13, %v366_v7  ;;  %v372_v44 = vrot.slane %v361_v12, 5 }
 0x152   :  { %v425_v58 = vsel %vm373_vm4, %v424_v14, %v423_v26  ;;  %v430_v52 = vrot.slane %v411_v9, 5  ;;  %v809_v27 = vsel %vm368_vm2, %v808_v42, %v807_v40  ;;  %v371_v17 = vsel %vm370_vm5, %v367_v13, %v369_v8 }
 0x153   :  { %v435_v19 = vsel %vm434_vm6, %v425_v58, 0.0  ;;  %v805_v28 = vsel %vm373_vm4, %v804_v20, %v803_v63  ;;  %v810_v6 = vrot.slane %v791_v39, 5  ;;  %v374_v49 = vsel %vm373_vm4, %v372_v44, %v371_v17 }
 0x154   :  { %v431_v46 = vsel %vm373_vm4, %v430_v52, %v429_v34  ;;  %v814_v47 = vsel %vm434_vm6, %v805_v28, 0.0  ;;  %v376_v23 = vsel %vm375_vm7, %v372_v44, %v374_v49  ;;  %v748_v33 = vsel %vm365_vm3, %v1282_v45, %v1292_v48 }
 0x155   :  { %v436_v36 = vsel %vm434_vm6, %v431_v46, 0.0  ;;  %v811_v13 = vsel %vm373_vm4, %v810_v6, %v809_v27  ;;  %378 = vst [vmem:[#allocation4] sm:$0xff] %v376_v23  ;;  %v750_v55 = vsel %vm368_vm2, %v1315_v30, %v748_v33  ;;  %v752_v57 = vrot.slane %v745_v16, 5 }
 0x156   :  { %v437_v53 = vadd.f32 %v436_v36, %v435_v19  ;;  %v815_v1 = vsel %vm434_vm6, %v811_v13, 0.0  ;;  %v751_v35 = vsel %vm370_vm5, %v1315_v30, %v750_v55 }
 0x157   :  { %v816_v10 = vadd.f32 %v815_v1, %v814_v47  ;;  %v753_v25 = vsel %vm373_vm4, %v752_v57, %v751_v35 }
 0x158   :  { %438 = vadd.xlane.f32.xlu0 %v437_v53  ;;  %v754_v45 = vsel %vm375_vm7, %v752_v57, %v753_v25 }
 0x159   :  { %757 = vst [vmem:[#allocation4 + $0x8] sm:$0xff] %v754_v45 }
 0x15c   :  { %817 = vadd.xlane.f32.xlu0 %v816_v10 }
 0x15d   :  { %946 = shalt.err (!%p943_p9)
}
 0x15e   :  { %s947_s9 = scalar_lea.hbm %s1392_s3, 256 }
 0x15f   :  { %p948_p10 = scmp.ne.s32.totalorder %s1392_s3, %s947_s9  ;;  %p951_p11 = scmp.lt.u32.totalorder %s947_s9, %s1392_s3 }
 0x161   :  { %p953_p12 = pnand %p951_p11, %p948_p10 }
 0x163   :  { %956 = shalt.err (!%p953_p12)
}
 0x164   :  { %s988_s14 = smov 128   ;;  %s989_s15 = smov 8   ;;  %vm828_vm8 = vcmask 0  }
 0x165   :  { %841 = dma.vmem_to_hbm [thread:$0]  %s836_s5, 256, %s1392_s3, [#allocation5], %s988_s14, %s988_s14, %s989_s15  }
 0x166   :  { %s990_s19 = smov [#allocation6]  }
 0x167   :  { %s851_s0 = sshll.u32 %s990_s19, 4  ;;  %s852_s0 = int_to_ptr.vmem [resolvable:$true] %s851_s0 }
 0x168   :  { %s957_s20 = scalar_lea.vmem %s852_s0, 16  ;;  %s961_s21 = scalar_lea.vmem %s852_s0, 32 }
 0x169   :  { %p958_p13 = scmp.ne.s32.totalorder %s852_s0, %s957_s20  ;;  %p962_p0 = scmp.lt.s32.totalorder %s852_s0, %s852_s0 }
 0x16a   :  { %p963_p1 = scmp.lt.s32.totalorder %s961_s21, %s957_s20 }
 0x16c   :  { %p964_p2 = por %p963_p1, %p962_p0 }
 0x16e   :  { %p965_p3 = pnand %p964_p2, %p958_p13 }
 0x1e5   :  { %v439_v48 = vpop.xlane.xlu0 %438 }
 0x1e6   :  { %v440_v30 = vrot.slane %v439_v48, 4 }
 0x1e8   :  { %v441_v50 = vadd.f32 %v440_v30, %v439_v48 }
 0x1e9   :  { %v818_v22 = vpop.xlane.xlu0 %817 }
 0x1ea   :  { %v442_v41 = vrot.slane %v441_v50, 2  ;;  %v819_v37 = vrot.slane %v818_v22, 4 }
 0x1ec   :  { %v820_v38 = vadd.f32 %v819_v37, %v818_v22  ;;  %v443_v54 = vadd.f32 %v442_v41, %v441_v50 }
 0x1ee   :  { %v821_v29 = vrot.slane %v820_v38, 2  ;;  %v444_v15 = vrot.slane %v443_v54, 1 }
 0x1f0   :  { %v822_v2 = vadd.f32 %v821_v29, %v820_v38  ;;  %v445_v0 = vadd.f32 %v444_v15, %v443_v54 }
 0x1f2   :  { %911 = vpush %v445_v0  ;;  %v823_v24 = vrot.slane %v822_v2, 1 }
 0x1f4   :  { %v824_v32 = vadd.f32 %v823_v24, %v822_v2 }
 0x1f6   :  { %913 = vpush %v824_v32 }
 0x223   :  { %s912_s18 = spop %911 }
 0x224   :  { %v447_v59 = vstv %s912_s18 }
 0x227   :  { %s914_s3 = spop %913 }
 0x228   :  { %v826_v26 = vstv %s914_s3 }
 0x229   :  { %v827_v60 = vadd.f32 %v826_v26, %v447_v59 }
 0x22b   :  { %829 = vst.msk [vmem:[#allocation6] sm:$0x1] %vm828_vm8, %v827_v60 }
 0x22c   :  { %968 = shalt.err (!%p965_p3)
}
 0x22d   :  { %s969_s24 = scalar_lea.hbm %s1393_s4, 16 }
 0x22e   :  { %p970_p4 = scmp.ne.s32.totalorder %s1393_s4, %s969_s24  ;;  %p973_p5 = scmp.lt.u32.totalorder %s969_s24, %s1393_s4 }
 0x230   :  { %p975_p6 = pnand %p973_p5, %p970_p4 }
 0x232   :  { %978 = shalt.err (!%p975_p6)
}
 0x233   :  { %854 = dma.vmem_to_hbm [thread:$0]  %s852_s0, 16, %s1393_s4, [#allocation7]  }
 0x234   :  { %981 = dma.done.wait [#allocation5], 256  }
 0x235   :  { %982 = vsyncadd [#allocation5], 4294967040 }
 0x236   :  { %983 = dma.done.wait [#allocation7], 16  }
 0x237   :  { %984 = vsyncadd [#allocation7], 4294967280 }
 0x238   :  { %861 = vsyncpa [#allocation5], 1 }
 0x239   :  { %862 = vsyncpa [#allocation7], 1 }

</bundles_post_ra>
